<compile_context>
chip_gen: v7x
topology: tpu7x:2x2x1
jax: 0.10.0
libtpu: 0.0.40
codegen_flags: <defaults>
</compile_context>

<pallas_src>
import functools

import jax
import jax.numpy as jnp
from jax.experimental import pallas as pl
from jax.experimental.pallas import tpu as pltpu

_LANE = 128
_SUBLANE = 8


def _round_up(x, m):
    return (x + m - 1) // m * m


def _decoder_kernel(x_ref, w1_ref, b1_ref, w2_ref, b2_ref, o_ref):
    # First linear: MXU matmul with fp32 accumulation.
    h = jnp.dot(x_ref[...], w1_ref[...], preferred_element_type=jnp.float32)
    # Bias + ReLU epilogue kept in fp32 on the VPU.
    h = jnp.maximum(h + b1_ref[...], 0.0)
    # Second linear: downcast activations to the weight compute dtype for the MXU,
    # accumulate fp32.
    y = jnp.dot(h.astype(w2_ref.dtype), w2_ref[...],
                preferred_element_type=jnp.float32)
    # Lane-dense (O padded to a multiple of 128) unmasked store.
    o_ref[...] = (y + b2_ref[...]).astype(o_ref.dtype)


@functools.partial(jax.jit, static_argnames=("block_m", "compute_dtype"))
def decoder_forward(x, w1, b1, w2, b2, *, block_m=512, compute_dtype=jnp.bfloat16):
    """x: (B, hidden), w1: (hidden, l1), b1: (1, l1), w2: (l1, out), b2: (1, out)."""
    B, H = x.shape
    L1 = w1.shape[1]
    O = w2.shape[1]
    out_dtype = x.dtype

    # Pad the output feature dim to a lane-dense width (multiple of 128).
    O_pad = _round_up(O, _LANE)

    cbytes = jnp.dtype(compute_dtype).itemsize

    # --- block_m policy -----------------------------------------------------
    # Conservative VMEM budget (12 MiB) that fits the default scoped-VMEM limit
    # on every generation (v5e 16 MiB, v6e/v7x 32 MiB), accounting for
    # double-buffering of every BlockSpec operand plus the fp32 `h` intermediate.
    budget = 12 << 20
    resident = 2 * cbytes * (H * L1 + L1 * O_pad) + 2 * 4 * (L1 + O_pad)
    per_row = 2 * cbytes * H + 2 * 4 * O_pad + 4 * L1
    bm_vmem = max(_SUBLANE, (max(budget - resident, 0) // per_row)
                  // _SUBLANE * _SUBLANE)
    bm = min(block_m, bm_vmem, _round_up(B, _SUBLANE))
    bm = max(_SUBLANE, bm // _SUBLANE * _SUBLANE)

    B_pad = _round_up(B, bm)
    grid_m = B_pad // bm

    # --- operand preparation (cast + pad in the wrapper, zero-cost semantics) --
    xc = x.astype(compute_dtype)
    if B_pad != B:
        xc = jnp.pad(xc, ((0, B_pad - B), (0, 0)))
    w1c = w1.astype(compute_dtype)
    b1f = b1.astype(jnp.float32)
    w2c = w2.astype(compute_dtype)
    b2f = b2.astype(jnp.float32)
    if O_pad != O:
        w2c = jnp.pad(w2c, ((0, 0), (0, O_pad - O)))
        b2f = jnp.pad(b2f, ((0, 0), (0, O_pad - O)))

    out = pl.pallas_call(
        _decoder_kernel,
        out_shape=jax.ShapeDtypeStruct((B_pad, O_pad), out_dtype),
        grid_spec=pltpu.PrefetchScalarGridSpec(
            num_scalar_prefetch=0,
            grid=(grid_m,),
            in_specs=[
                pl.BlockSpec((bm, H), lambda i: (i, 0)),       # x tile over batch
                pl.BlockSpec((H, L1), lambda i: (0, 0)),       # w1 resident
                pl.BlockSpec((1, L1), lambda i: (0, 0)),       # b1 resident (fp32)
                pl.BlockSpec((L1, O_pad), lambda i: (0, 0)),   # w2 resident (padded)
                pl.BlockSpec((1, O_pad), lambda i: (0, 0)),    # b2 resident (padded)
            ],
            out_specs=pl.BlockSpec((bm, O_pad), lambda i: (i, 0)),
        ),
        compiler_params=pltpu.CompilerParams(
            # Batch axis is independent -> shards across v7x's 2 TensorCores.
            dimension_semantics=("parallel",)),
    )(xc, w1c, b1f, w2c, b2f)

    # Drop batch padding and the zero-padded output columns.
    return out[:B, :O]


def init_decoder_params(key, hidden_size, l1_size, output_size, dtype=jnp.float32):
    """Deterministic init mimicking PyTorch nn.Linear default (U[-1/sqrt(fan_in), 1/sqrt(fan_in)])."""
    k1, k2, k3, k4 = jax.random.split(key, 4)
    bound1 = 1.0 / jnp.sqrt(hidden_size)
    bound2 = 1.0 / jnp.sqrt(l1_size)
    w1 = jax.random.uniform(k1, (hidden_size, l1_size), dtype, -bound1, bound1)
    b1 = jax.random.uniform(k2, (1, l1_size), dtype, -bound1, bound1)
    w2 = jax.random.uniform(k3, (l1_size, output_size), dtype, -bound2, bound2)
    b2 = jax.random.uniform(k4, (1, output_size), dtype, -bound2, bound2)
    return w1, b1, w2, b2


def decoder_reference(x, w1, b1, w2, b2):
    """Pure-JAX reference of the PyTorch forward for correctness check."""
    h = jnp.maximum(x @ w1 + b1, 0.0)
    return h @ w2 + b2


if __name__ == "__main__":
    # Small shapes consistent with Decoder(output_size, l1_size, hidden_size)
    batch = 8
    hidden_size = 32
    l1_size = 64
    output_size = 16

    key = jax.random.PRNGKey(0)
    kx, kp = jax.random.split(key)
    x = jax.random.normal(kx, (batch, hidden_size), dtype=jnp.float32)
    w1, b1, w2, b2 = init_decoder_params(kp, hidden_size, l1_size, output_size)

    ref = decoder_reference(x, w1, b1, w2, b2)

    # Exact-semantics path: fp32 MXU inputs -> matches PyTorch fp32 tightly.
    out_f32 = jax.block_until_ready(
        decoder_forward(x, w1, b1, w2, b2, compute_dtype=jnp.float32))
    assert out_f32.shape == (batch, output_size)
    assert jnp.allclose(out_f32, ref, atol=1e-5, rtol=1e-5)

    # Default mixed-precision path: bf16 MXU inputs, fp32 accumulate/epilogue.
    out_bf16 = jax.block_until_ready(decoder_forward(x, w1, b1, w2, b2))
    assert out_bf16.shape == (batch, output_size)
    assert jnp.allclose(out_bf16, ref, atol=5e-2, rtol=5e-2)

    print("KERNEL_OK")
</pallas_src>

<mosaic_0001>
module attributes {stable_mosaic.version = 11 : i64} {
  func.func @_decoder_kernel(%arg0: i32, %arg1: memref<8x32xf32, #tpu.memory_space<vmem>>, %arg2: memref<32x64xf32, #tpu.memory_space<vmem>>, %arg3: memref<1x64xf32, #tpu.memory_space<vmem>>, %arg4: memref<64x128xf32, #tpu.memory_space<vmem>>, %arg5: memref<1x128xf32, #tpu.memory_space<vmem>>, %arg6: memref<8x128xf32, #tpu.memory_space<vmem>>) attributes {dimension_semantics = [#tpu.dimension_semantics<parallel>], iteration_bounds = array<i64: 1>, scalar_prefetch = 0 : i64, scratch_operands = 0 : i64, tpu.core_type = #tpu.core_type<tc>, window_params = [{transform_indices = @transform_0, window_bounds = array<i64: 8, 32>}, {pipeline_mode = #tpu.pipeline_mode<synchronous>, transform_indices = @transform_1, window_bounds = array<i64: 32, 64>}, {pipeline_mode = #tpu.pipeline_mode<synchronous>, transform_indices = @transform_2, window_bounds = array<i64: 1, 64>}, {pipeline_mode = #tpu.pipeline_mode<synchronous>, transform_indices = @transform_3, window_bounds = array<i64: 64, 128>}, {pipeline_mode = #tpu.pipeline_mode<synchronous>, transform_indices = @transform_4, window_bounds = array<i64: 1, 128>}, {transform_indices = @transform_5, window_bounds = array<i64: 8, 128>}]} {
    %c0 = arith.constant 0 : index
    %c0_0 = arith.constant 0 : index
    %0 = vector.load %arg1[%c0, %c0_0] : memref<8x32xf32, #tpu.memory_space<vmem>>, vector<8x32xf32>
    %c0_1 = arith.constant 0 : index
    %c0_2 = arith.constant 0 : index
    %1 = vector.load %arg2[%c0_1, %c0_2] : memref<32x64xf32, #tpu.memory_space<vmem>>, vector<32x64xf32>
    %cst = arith.constant dense<0.000000e+00> : vector<8x64xf32>
    %2 = tpu.matmul %0, %1, %cst {dimension_numbers = #tpu.dot_dimension_numbers<[1], [0], [0], [1], [0, 0, 1, 1], [], []>} : vector<8x32xf32>, vector<32x64xf32>, vector<8x64xf32> -> vector<8x64xf32>
    %c0_3 = arith.constant 0 : index
    %c0_4 = arith.constant 0 : index
    %3 = vector.load %arg3[%c0_3, %c0_4] : memref<1x64xf32, #tpu.memory_space<vmem>>, vector<1x64xf32>
    %4 = vector.broadcast %3 : vector<1x64xf32> to vector<8x64xf32>
    %5 = arith.addf %2, %4 : vector<8x64xf32>
    %cst_5 = arith.constant 0.000000e+00 : f32
    %6 = vector.broadcast %cst_5 : f32 to vector<8x64xf32>
    %7 = arith.maximumf %5, %6 : vector<8x64xf32>
    %c0_6 = arith.constant 0 : index
    %c0_7 = arith.constant 0 : index
    %8 = vector.load %arg4[%c0_6, %c0_7] : memref<64x128xf32, #tpu.memory_space<vmem>>, vector<64x128xf32>
    %cst_8 = arith.constant dense<0.000000e+00> : vector<8x128xf32>
    %9 = tpu.matmul %7, %8, %cst_8 {dimension_numbers = #tpu.dot_dimension_numbers<[1], [0], [0], [1], [0, 0, 1, 1], [], []>} : vector<8x64xf32>, vector<64x128xf32>, vector<8x128xf32> -> vector<8x128xf32>
    %c0_9 = arith.constant 0 : index
    %c0_10 = arith.constant 0 : index
    %10 = vector.load %arg5[%c0_9, %c0_10] : memref<1x128xf32, #tpu.memory_space<vmem>>, vector<1x128xf32>
    %11 = vector.broadcast %10 : vector<1x128xf32> to vector<8x128xf32>
    %12 = arith.addf %9, %11 : vector<8x128xf32>
    %c0_11 = arith.constant 0 : index
    %c0_12 = arith.constant 0 : index
    %13 = vector.load %arg6[%c0_11, %c0_12] : memref<8x128xf32, #tpu.memory_space<vmem>>, vector<8x128xf32>
    tpu.vector_store %arg6[%c0_11, %c0_12], %12 {strides = array<i32>} : memref<8x128xf32, #tpu.memory_space<vmem>>, vector<8x128xf32>,
    return
  }
  func.func @transform_0(%arg0: i32) -> (i32, i32) {
    %c0_i32 = arith.constant 0 : i32
    %c0_i32_0 = arith.constant 0 : i32
    return %arg0, %c0_i32 : i32, i32
  }
  func.func @transform_1(%arg0: i32) -> (i32, i32) {
    %c0_i32 = arith.constant 0 : i32
    %c0_i32_0 = arith.constant 0 : i32
    %c0_i32_1 = arith.constant 0 : i32
    return %c0_i32, %c0_i32_0 : i32, i32
  }
  func.func @transform_2(%arg0: i32) -> (i32, i32) {
    %c0_i32 = arith.constant 0 : i32
    %c0_i32_0 = arith.constant 0 : i32
    %c0_i32_1 = arith.constant 0 : i32
    return %c0_i32, %c0_i32_0 : i32, i32
  }
  func.func @transform_3(%arg0: i32) -> (i32, i32) {
    %c0_i32 = arith.constant 0 : i32
    %c0_i32_0 = arith.constant 0 : i32
    %c0_i32_1 = arith.constant 0 : i32
    return %c0_i32, %c0_i32_0 : i32, i32
  }
  func.func @transform_4(%arg0: i32) -> (i32, i32) {
    %c0_i32 = arith.constant 0 : i32
    %c0_i32_0 = arith.constant 0 : i32
    %c0_i32_1 = arith.constant 0 : i32
    return %c0_i32, %c0_i32_0 : i32, i32
  }
  func.func @transform_5(%arg0: i32) -> (i32, i32) {
    %c0_i32 = arith.constant 0 : i32
    %c0_i32_0 = arith.constant 0 : i32
    return %arg0, %c0_i32 : i32, i32
  }
}

</mosaic_0001>

<bundles_post_ra>
// kernel: decoder_forward.1
= control target key start
LH: loop header
LB: loop body
LE: loop exit
PB: predicated region body
PF: predicated region fallthrough
CT: control target
= control target key end

     0   :  { %v306_v3 = vmov 0.0|0.0   ;;  %vm307_vm0 = vmmov 0   ;;  %v308_v6 = vmov 0.0   ;;  %s397_s0 = inlined_call_operand.vmem [shape: f32[8,32], index: 0, kind: input, shape index: {}]   ;;  %s398_s1 = inlined_call_operand.vmem [shape: f32[32,64], index: 1, kind: input, shape index: {}]   ;;  %s399_s2 = inlined_call_operand.vmem [shape: f32[1,64], index: 2, kind: input, shape index: {}]   ;;  %s400_s3 = inlined_call_operand.vmem [shape: f32[64,128], index: 3, kind: input, shape index: {}]   ;;  %s401_s4 = inlined_call_operand.vmem [shape: f32[1,128], index: 4, kind: input, shape index: {}]   ;;  %s402_s5 = inlined_call_operand.hbm [shape: f32[8,128], index: 5, kind: output, shape index: {}]  }
   0x1   :  { %v22_v0 = vld [vmem:[%s398_s1] sm:$0xff]  ;;  %v23_v1 = vld [vmem:[%s398_s1 + $0x8] sm:$0xff]  ;;  %v24_v2 = vld [vmem:[%s398_s1 + $0x10] sm:$0xff]  ;;  %260 = vmatprep.subr.bf16.mxu0 %v306_v3  ;;  %238 = vmatprep.mubr.msk.f32.mxu0 %vm307_vm0, %v308_v6 }
   0x2   :  { %v261_v4 = vpack.c.bf16 %v23_v1, %v22_v0  ;;  %v25_v5 = vld [vmem:[%s398_s1 + $0x18] sm:$0xff]  ;;  %v108_v7 = vld [vmem:[%s400_s3] sm:$0xff]  ;;  %266 = vmatprep.subr.bf16.mxu1 %v306_v3  ;;  %v109_v8 = vld [vmem:[%s400_s3 + $0x8] sm:$0xff]  ;;  %257 = vmatprep.mubr.msk.f32.mxu1 %vm307_vm0, %v308_v6 }
   0x3   :  { %v110_v9 = vld [vmem:[%s400_s3 + $0x10] sm:$0xff]  ;;  %v111_v10 = vld [vmem:[%s400_s3 + $0x18] sm:$0xff]  ;;  %v264_v11 = vpack.c.bf16 %v25_v5, %v24_v2  ;;  %v267_v12 = vpack.c.bf16 %v109_v8, %v108_v7 }
   0x4   :  { %262 = vmatpush3.bf16.msra.mxu0 %v261_v4 }
   0x5   :  { %263 = vmatprep.subr.bf16.mxu0 %v306_v3 }
   0x6   :  { %10 = vsyncpa [#allocation3], 0  ;;  %268 = vmatpush3.bf16.msra.mxu1 %v267_v12  ;;  %v270_v13 = vpack.c.bf16 %v111_v10, %v110_v9  ;;  %v112_v14 = vld [vmem:[%s400_s3 + $0x20] sm:$0xff]  ;;  %v113_v15 = vld [vmem:[%s400_s3 + $0x28] sm:$0xff]  ;;  %vm33_vm1 = vcmask 261120   ;;  %vm123_vm2 = vcmask 523264  }
   0x7   :  { %269 = vmatprep.subr.bf16.mxu1 %v306_v3  ;;  %v21_v16 = vld [vmem:[%s397_s0] sm:$0xff]  ;;  %v273_v17 = vpack.c.bf16 %v113_v15, %v112_v14  ;;  %v114_v18 = vld [vmem:[%s400_s3 + $0x30] sm:$0xff]  ;;  %v115_v19 = vld [vmem:[%s400_s3 + $0x38] sm:$0xff]  ;;  %s309_s21 = smov [#allocation2]  }
   0x8   :  { %265 = vmatpush3.bf16.msra.mxu0 %v264_v11  ;;  %v276_v20 = vpack.c.bf16 %v115_v19, %v114_v18  ;;  %v212_v21 = vld [vmem:[%s399_s2] ss:$0 sm:$0xff]  ;;  %s204_s22 = sshll.u32 %s309_s21, 4  ;;  %s205_s22 = int_to_ptr.vmem [resolvable:$true] %s204_s22 }
   0x9   :  { %v214_v26 = vld [vmem:[%s401_s4] ss:$0 sm:$0xff]  ;;  %s282_s3 = scalar_lea.vmem %s205_s22, 128  ;;  %p287_p1 = scmp.lt.s32.totalorder %s205_s22, %s205_s22 }
   0xa   :  { %271 = vmatpush3.bf16.msra.mxu1 %v270_v13  ;;  %p283_p0 = scmp.ne.s32.totalorder %s205_s22, %s282_s3  ;;  %p288_p2 = scmp.lt.s32.totalorder %s282_s3, %s282_s3 }
   0xb   :  { %239 = vmatmul.mubr.msk.f32.vlgmr.msra.gmra.mrb[0].mxu0 %vm33_vm1, %v21_v16  ;;  %272 = vmatprep.subr.bf16.mxu1 %v306_v3 }
   0xc   :  { %p289_p3 = por %p288_p2, %p287_p1 }
   0xe   :  { %274 = vmatpush3.bf16.msra.mxu1 %v273_v17  ;;  %p290_p4 = pnand %p289_p3, %p283_p0 }
   0xf   :  { %275 = vmatprep.subr.bf16.mxu1 %v306_v3 }
  0x12   :  { %277 = vmatpush3.bf16.msra.mxu1 %v276_v20 }
  0xde   :  { %v103_v22 = vpop.f32.mrb[0].mxu0 }
  0xdf   :  { %v104_v23 = vadd.f32 %v212_v21, %v103_v22  ;;  %v240_v24 = vpop.f32.mrb[1].mxu0 }
  0xe1   :  { %v107_v25 = vmax.f32 %v104_v23, 0.0 }
  0xe3   :  { %258 = vmatmul.mubr.msk.f32.vlgmr.msra.gmra.mrb[0].mxu1 %vm123_vm2, %v107_v25 }
 0x1b6   :  { %v193_v27 = vpop.f32.mrb[0].mxu1 }
 0x1b7   :  { %v194_v28 = vadd.f32 %v214_v26, %v193_v27  ;;  %v259_v29 = vpop.f32.mrb[1].mxu1 }
 0x1b9   :  { %197 = vst [vmem:[#allocation2] sm:$0xff] %v194_v28 }
 0x1ba   :  { %293 = shalt.err (!%p290_p4)
}
 0x1bb   :  { %s294_s24 = scalar_lea.hbm %s402_s5, 128 }
 0x1bc   :  { %p295_p5 = scmp.ne.s32.totalorder %s402_s5, %s294_s24  ;;  %p298_p6 = scmp.lt.u32.totalorder %s294_s24, %s402_s5 }
 0x1be   :  { %p300_p7 = pnand %p298_p6, %p295_p5 }
 0x1c0   :  { %303 = shalt.err (!%p300_p7)
}
 0x1c1   :  { %207 = dma.vmem_to_hbm [thread:$0]  %s205_s22, 128, %s402_s5, [#allocation3]  }
 0x1c2   :  { %304 = dma.done.wait [#allocation3], 128  }
 0x1c3   :  { %305 = vsyncadd [#allocation3], 4294967168 }
 0x1c4   :  { %211 = vsyncpa [#allocation3], 1 }

</bundles_post_ra>
